<compile_context>
chip_gen: v5e
topology: v5e:2x2
jax: 0.10.0
libtpu: 0.0.40
codegen_flags: <defaults>
</compile_context>

<pallas_src>
import functools

import jax
import jax.numpy as jnp
from jax.experimental import pallas as pl
from jax.experimental.pallas import tpu as pltpu


HIDDEN = 256
LANE = 128
NEG_INF = -1e30  # padded actor-head bias: softmax weight ~ 0 for padded lanes
TB_MAX = 1024    # batch-tile cap: well inside scoped VMEM on every generation


def _round_up(x, m):
    return (x + m - 1) // m * m


def _use_bf16_tanh():
    """bf16 tanh only where the EUP/VPU has a bf16 path (v6e / v7x)."""
    try:
        kind = jax.devices()[0].device_kind.lower()
    except Exception:  # pragma: no cover - be permissive off-TPU
        return True
    return not any(tag in kind for tag in ("v2", "v3", "v4", "v5"))


_BF16_TANH = _use_bf16_tanh()


# ------------------------------- kernel ---------------------------------------
def _actor_critic_kernel(val_col, bf16_tanh,
                         state_ref, w1_ref, w23_ref, b_ref, out_ref):
    AP = out_ref.shape[-1]                       # lane-padded actor width
    x = state_ref[...].astype(jnp.bfloat16)      # (TB, S)

    def act(pre_f32):
        # bf16 tanh on v6e/v7x (bf16 EUP), f32 tanh on v5e and older.
        return jnp.tanh(pre_f32.astype(jnp.bfloat16)) if bf16_tanh else jnp.tanh(pre_f32)

    # ---- fused layer 1: both towers share LHS -> one K=S, N=512 matmul ------
    b1 = b_ref[0:1, : 2 * HIDDEN]                                    # (1, 512) f32
    h1 = act(jnp.dot(x, w1_ref[...], preferred_element_type=jnp.float32) + b1)

    # static, 128-lane-aligned slices (no relayout expected)
    h_a = h1[:, :HIDDEN].astype(jnp.bfloat16)
    h_c = h1[:, HIDDEN:].astype(jnp.bfloat16)

    # ---- packed layer-2 / actor-head weights (static lane slices) -----------
    aw2 = w23_ref[:, :HIDDEN]
    cw2 = w23_ref[:, HIDDEN: 2 * HIDDEN]
    aw3 = w23_ref[:, 2 * HIDDEN:]                                    # (256, AP)

    ab2 = b_ref[1:2, :HIDDEN]
    cb2 = b_ref[1:2, HIDDEN: 2 * HIDDEN]
    ab3 = b_ref[2:3, :AP]                                            # padded with -1e30
    cw3 = b_ref[3:4, :HIDDEN]                                        # critic head row (f32)
    cb3 = b_ref[3:4, HIDDEN: HIDDEN + 1]                             # (1, 1)

    # ---- layer 2 (per tower) -------------------------------------------------
    h2a = act(jnp.dot(h_a, aw2, preferred_element_type=jnp.float32) + ab2)
    h2c = act(jnp.dot(h_c, cw2, preferred_element_type=jnp.float32) + cb2)

    # ---- actor head (MXU, lane-dense padded logits -> log-probs) ------------
    logits = (jnp.dot(h2a.astype(jnp.bfloat16), aw3,
                      preferred_element_type=jnp.float32) + ab3)     # (TB, AP)
    m = jnp.max(logits, axis=-1, keepdims=True)
    lse = m + jnp.log(jnp.sum(jnp.exp(logits - m), axis=-1, keepdims=True))
    logp = logits - lse

    # ---- critic head: VPU multiply + XLU lane reduce (no MXU work) ----------
    value = jnp.sum(h2c.astype(jnp.float32) * cw3, axis=-1, keepdims=True) + cb3

    # ---- merged output: value parked in padded lane `val_col` ----------------
    col = jax.lax.broadcasted_iota(jnp.int32, logp.shape, 1)
    out_ref[...] = jnp.where(col == val_col, value, logp)


# ------------------------------- wrapper ---------------------------------------
def _choose_tb(batch):
    # Big tiles for HBM-roofline efficiency, but >= 2 grid steps for larger
    # batches so the "parallel" axis can shard across v7x's two TensorCores.
    half = -(-batch // 2)
    return min(TB_MAX, _round_up(max(half, 8), 8))


@functools.partial(jax.jit, static_argnames=("action_dim",))
def actor_critic_forward(state, packed, action_dim):
    """state: (B, S) float32 -> (probs (B,A), log_probs (B,A), values (B,1))."""
    B, S = state.shape
    AP = packed["w23"].shape[1] - 2 * HIDDEN     # lane-padded actor width (>=128)

    TB = _choose_tb(B)
    Bp = _round_up(B, TB)
    if Bp != B:
        state = jnp.pad(state, ((0, Bp - B), (0, 0)))

    def resident(shape):                         # weights: same block every step
        return pl.BlockSpec(shape, lambda i: (0, 0))

    out_slab = pl.pallas_call(
        functools.partial(_actor_critic_kernel, action_dim, _BF16_TANH),
        out_shape=jax.ShapeDtypeStruct((Bp, AP), jnp.float32),
        grid=(Bp // TB,),
        in_specs=[
            pl.BlockSpec((TB, S), lambda i: (i, 0)),
            resident(packed["w1"].shape),
            resident(packed["w23"].shape),
            resident(packed["bias"].shape),
        ],
        out_specs=pl.BlockSpec((TB, AP), lambda i: (i, 0)),
        compiler_params=pltpu.CompilerParams(
            dimension_semantics=("parallel",),   # batch axis -> both TCs on v7x
        ),
    )(state, packed["w1"], packed["w23"], packed["bias"])

    logp = out_slab[:B, :action_dim]
    probs = jnp.exp(logp)
    values = out_slab[:B, action_dim:action_dim + 1]
    return probs, logp, values


# ------------------------- parameter init & packing ---------------------------
def _linear_init(key, fan_in, fan_out):
    """PyTorch nn.Linear default init: U(-1/sqrt(fan_in), 1/sqrt(fan_in))."""
    kw, kb = jax.random.split(key)
    bound = 1.0 / jnp.sqrt(jnp.float32(fan_in))
    w = jax.random.uniform(kw, (fan_in, fan_out), jnp.float32, -bound, bound)
    b = jax.random.uniform(kb, (1, fan_out), jnp.float32, -bound, bound)
    return w, b


def init_actor_critic_params(key, state_dim, action_dim):
    keys = jax.random.split(key, 6)
    aw1, ab1 = _linear_init(keys[0], state_dim, HIDDEN)
    aw2, ab2 = _linear_init(keys[1], HIDDEN, HIDDEN)
    aw3, ab3 = _linear_init(keys[2], HIDDEN, action_dim)
    cw1, cb1 = _linear_init(keys[3], state_dim, HIDDEN)
    cw2, cb2 = _linear_init(keys[4], HIDDEN, HIDDEN)
    cw3, cb3 = _linear_init(keys[5], HIDDEN, 1)
    return dict(
        aw1=aw1, ab1=ab1, aw2=aw2, ab2=ab2, aw3=aw3, ab3=ab3,
        cw1=cw1, cb1=cb1, cw2=cw2, cb2=cb2, cw3=cw3, cb3=cb3,
    )


def pack_params(params, action_dim):
    """Pack raw f32 params into the kernel layout.

    w1   : (S, 512)        bf16   [actor L1 | critic L1]
    w23  : (256, 512 + AP) bf16   [actor L2 | critic L2 | actor head (padded)]
    bias : (4, BW)         f32    row0 = [ab1|cb1], row1 = [ab2|cb2],
                                  row2 = actor head bias (pads = -1e30),
                                  row3 = [cw3 row | cb3 at lane 256]
    """
    # AP >= action_dim + 1 so the value column never collides with a real logit.
    AP = _round_up(action_dim + 1, LANE)
    BW = max(2 * HIDDEN, AP)

    w1 = jnp.concatenate([params["aw1"], params["cw1"]], axis=1).astype(jnp.bfloat16)

    aw3p = jnp.zeros((HIDDEN, AP), jnp.float32).at[:, :action_dim].set(params["aw3"])
    w23 = jnp.concatenate([params["aw2"], params["cw2"], aw3p],
                          axis=1).astype(jnp.bfloat16)

    ab3p = jnp.full((AP,), NEG_INF, jnp.float32).at[:action_dim].set(params["ab3"][0])

    bias = jnp.zeros((4, BW), jnp.float32)
    bias = bias.at[0, : 2 * HIDDEN].set(
        jnp.concatenate([params["ab1"][0], params["cb1"][0]]))
    bias = bias.at[1, :HIDDEN].set(params["ab2"][0])
    bias = bias.at[1, HIDDEN: 2 * HIDDEN].set(params["cb2"][0])
    bias = bias.at[2, :AP].set(ab3p)                         # stays f32 (keep -1e30 exact)
    bias = bias.at[3, :HIDDEN].set(params["cw3"][:, 0])      # critic head weight row
    bias = bias.at[3, HIDDEN].set(params["cb3"][0, 0])       # critic head bias

    return dict(w1=w1, w23=w23, bias=bias)


# ------------------- act / evaluate (JAX glue on kernel outputs) ---------------
def act(packed, state, sample_key, action_dim):
    probs, logp, values = actor_critic_forward(state, packed, action_dim)
    action = jax.random.categorical(sample_key, logp, axis=-1)
    action_logprob = jnp.take_along_axis(logp, action[:, None], axis=-1).squeeze(-1)
    return action, action_logprob, values


def evaluate(packed, state, action, action_dim):
    probs, logp, values = actor_critic_forward(state, packed, action_dim)
    action_logprobs = jnp.take_along_axis(logp, action[:, None], axis=-1).squeeze(-1)
    entropy = -jnp.sum(probs * logp, axis=-1)
    return action_logprobs, values, entropy


# ------------------------------ f32 reference ----------------------------------
def _reference_forward(params, state):
    def tower(x, w1, b1, w2, b2, w3, b3):
        h = jnp.tanh(x @ w1 + b1)
        h = jnp.tanh(h @ w2 + b2)
        return h @ w3 + b3

    logits = tower(state, params["aw1"], params["ab1"], params["aw2"],
                   params["ab2"], params["aw3"], params["ab3"])
    probs = jax.nn.softmax(logits, axis=-1)
    values = tower(state, params["cw1"], params["cb1"], params["cw2"],
                   params["cb2"], params["cw3"], params["cb3"])
    return probs, values


if __name__ == "__main__":
    # Small synthetic shapes consistent with the module:
    # state_dim from env.state length, action_dim from env.action_list rows.
    # TODO(synk): metaEnv.EnvironmentTraining is external; shapes are stand-ins.
    STATE_DIM = 16
    ACTION_DIM = 8
    BATCH = 8

    root = jax.random.PRNGKey(0)
    k_params, k_state, k_sample, k_action = jax.random.split(root, 4)

    params = init_actor_critic_params(k_params, STATE_DIM, ACTION_DIM)
    packed = pack_params(params, ACTION_DIM)
    state = jax.random.normal(k_state, (BATCH, STATE_DIM), jnp.float32)

    # forward hot path (fused Pallas kernel)
    probs, logp, values = actor_critic_forward(state, packed, ACTION_DIM)
    probs, logp, values = jax.block_until_ready((probs, logp, values))

    assert probs.shape == (BATCH, ACTION_DIM)
    assert logp.shape == (BATCH, ACTION_DIM)
    assert values.shape == (BATCH, 1)
    assert bool(jnp.all(jnp.isfinite(probs)))
    assert bool(jnp.all(jnp.isfinite(logp)))
    assert bool(jnp.all(jnp.isfinite(values)))
    assert bool(jnp.allclose(jnp.sum(probs, axis=-1), 1.0, atol=1e-5))

    # compare against the f32 reference (bf16 matmul operands -> loose tol)
    ref_probs, ref_values = _reference_forward(params, state)
    assert bool(jnp.allclose(probs, ref_probs, atol=5e-2))
    assert bool(jnp.allclose(values, ref_values, atol=1e-1))

    # exercise act / evaluate glue once
    a, lp, v = act(packed, state, k_sample, ACTION_DIM)
    jax.block_until_ready((a, lp, v))
    actions = jax.random.randint(k_action, (BATCH,), 0, ACTION_DIM)
    alp, sv, ent = evaluate(packed, state, actions, ACTION_DIM)
    jax.block_until_ready((alp, sv, ent))

    print("KERNEL_OK")
</pallas_src>

<mosaic_0001>
module attributes {stable_mosaic.version = 11 : i64} {
  func.func @_actor_critic_kernel(%arg0: i32, %arg1: memref<8x16xf32, #tpu.memory_space<vmem>>, %arg2: memref<16x512xbf16, #tpu.memory_space<vmem>>, %arg3: memref<256x640xbf16, #tpu.memory_space<vmem>>, %arg4: memref<4x512xf32, #tpu.memory_space<vmem>>, %arg5: memref<8x128xf32, #tpu.memory_space<vmem>>) attributes {dimension_semantics = [#tpu.dimension_semantics<parallel>], iteration_bounds = array<i64: 1>, scalar_prefetch = 0 : i64, scratch_operands = 0 : i64, tpu.core_type = #tpu.core_type<tc>, window_params = [{transform_indices = @transform_0, window_bounds = array<i64: 8, 16>}, {pipeline_mode = #tpu.pipeline_mode<synchronous>, transform_indices = @transform_1, window_bounds = array<i64: 16, 512>}, {pipeline_mode = #tpu.pipeline_mode<synchronous>, transform_indices = @transform_2, window_bounds = array<i64: 256, 640>}, {pipeline_mode = #tpu.pipeline_mode<synchronous>, transform_indices = @transform_3, window_bounds = array<i64: 4, 512>}, {transform_indices = @transform_4, window_bounds = array<i64: 8, 128>}]} {
    %c0 = arith.constant 0 : index
    %c0_0 = arith.constant 0 : index
    %0 = vector.load %arg1[%c0, %c0_0] : memref<8x16xf32, #tpu.memory_space<vmem>>, vector<8x16xf32>
    %1 = arith.truncf %0 : vector<8x16xf32> to vector<8x16xbf16>
    %c0_1 = arith.constant 0 : index
    %c0_2 = arith.constant 0 : index
    %2 = vector.load %arg4[%c0_1, %c0_2] : memref<4x512xf32, #tpu.memory_space<vmem>>, vector<1x512xf32>
    %c0_3 = arith.constant 0 : index
    %c0_4 = arith.constant 0 : index
    %3 = vector.load %arg2[%c0_3, %c0_4] : memref<16x512xbf16, #tpu.memory_space<vmem>>, vector<16x512xbf16>
    %cst = arith.constant dense<0.000000e+00> : vector<8x512xf32>
    %4 = tpu.matmul %1, %3, %cst {dimension_numbers = #tpu.dot_dimension_numbers<[1], [0], [0], [1], [0, 0, 1, 1], [], []>} : vector<8x16xbf16>, vector<16x512xbf16>, vector<8x512xf32> -> vector<8x512xf32>
    %5 = vector.broadcast %2 : vector<1x512xf32> to vector<8x512xf32>
    %6 = arith.addf %4, %5 : vector<8x512xf32>
    %7 = arith.truncf %6 : vector<8x512xf32> to vector<8x512xbf16>
    %8 = math.tanh %7 : vector<8x512xbf16>
    %9 = vector.extract_strided_slice %8 {offsets = [0, 0], sizes = [8, 256], strides = [1, 1]} : vector<8x512xbf16> to vector<8x256xbf16>
    %10 = vector.extract_strided_slice %8 {offsets = [0, 256], sizes = [8, 256], strides = [1, 1]} : vector<8x512xbf16> to vector<8x256xbf16>
    %c0_5 = arith.constant 0 : index
    %c0_6 = arith.constant 0 : index
    %11 = vector.load %arg3[%c0_5, %c0_6] : memref<256x640xbf16, #tpu.memory_space<vmem>>, vector<256x256xbf16>
    %c0_7 = arith.constant 0 : index
    %c256 = arith.constant 256 : index
    %12 = vector.load %arg3[%c0_7, %c256] : memref<256x640xbf16, #tpu.memory_space<vmem>>, vector<256x256xbf16>
    %c0_8 = arith.constant 0 : index
    %c512 = arith.constant 512 : index
    %13 = vector.load %arg3[%c0_8, %c512] : memref<256x640xbf16, #tpu.memory_space<vmem>>, vector<256x128xbf16>
    %c1 = arith.constant 1 : index
    %c0_9 = arith.constant 0 : index
    %14 = vector.load %arg4[%c1, %c0_9] : memref<4x512xf32, #tpu.memory_space<vmem>>, vector<1x256xf32>
    %c1_10 = arith.constant 1 : index
    %c256_11 = arith.constant 256 : index
    %15 = vector.load %arg4[%c1_10, %c256_11] : memref<4x512xf32, #tpu.memory_space<vmem>>, vector<1x256xf32>
    %c2 = arith.constant 2 : index
    %c0_12 = arith.constant 0 : index
    %16 = vector.load %arg4[%c2, %c0_12] : memref<4x512xf32, #tpu.memory_space<vmem>>, vector<1x128xf32>
    %c3 = arith.constant 3 : index
    %c0_13 = arith.constant 0 : index
    %17 = vector.load %arg4[%c3, %c0_13] : memref<4x512xf32, #tpu.memory_space<vmem>>, vector<1x256xf32>
    %c3_14 = arith.constant 3 : index
    %c256_15 = arith.constant 256 : index
    %18 = vector.load %arg4[%c3_14, %c256_15] : memref<4x512xf32, #tpu.memory_space<vmem>>, vector<1x1xf32>
    %cst_16 = arith.constant dense<0.000000e+00> : vector<8x256xf32>
    %19 = tpu.matmul %9, %11, %cst_16 {dimension_numbers = #tpu.dot_dimension_numbers<[1], [0], [0], [1], [0, 0, 1, 1], [], []>} : vector<8x256xbf16>, vector<256x256xbf16>, vector<8x256xf32> -> vector<8x256xf32>
    %20 = vector.broadcast %14 : vector<1x256xf32> to vector<8x256xf32>
    %21 = arith.addf %19, %20 : vector<8x256xf32>
    %22 = arith.truncf %21 : vector<8x256xf32> to vector<8x256xbf16>
    %23 = math.tanh %22 : vector<8x256xbf16>
    %cst_17 = arith.constant dense<0.000000e+00> : vector<8x256xf32>
    %24 = tpu.matmul %10, %12, %cst_17 {dimension_numbers = #tpu.dot_dimension_numbers<[1], [0], [0], [1], [0, 0, 1, 1], [], []>} : vector<8x256xbf16>, vector<256x256xbf16>, vector<8x256xf32> -> vector<8x256xf32>
    %25 = vector.broadcast %15 : vector<1x256xf32> to vector<8x256xf32>
    %26 = arith.addf %24, %25 : vector<8x256xf32>
    %27 = arith.truncf %26 : vector<8x256xf32> to vector<8x256xbf16>
    %28 = math.tanh %27 : vector<8x256xbf16>
    %cst_18 = arith.constant dense<0.000000e+00> : vector<8x128xf32>
    %29 = tpu.matmul %23, %13, %cst_18 {dimension_numbers = #tpu.dot_dimension_numbers<[1], [0], [0], [1], [0, 0, 1, 1], [], []>} : vector<8x256xbf16>, vector<256x128xbf16>, vector<8x128xf32> -> vector<8x128xf32>
    %30 = vector.broadcast %16 : vector<1x128xf32> to vector<8x128xf32>
    %31 = arith.addf %29, %30 : vector<8x128xf32>
    %cst_19 = arith.constant dense<0xFF800000> : vector<8xf32>
    %32 = vector.multi_reduction <maximumf>, %31, %cst_19 [1] : vector<8x128xf32> to vector<8xf32>
    %33 = vector.shape_cast %32 : vector<8xf32> to vector<8x1xf32>
    %34 = vector.broadcast %33 : vector<8x1xf32> to vector<8x128xf32>
    %35 = arith.subf %31, %34 : vector<8x128xf32>
    %36 = math.exp %35 : vector<8x128xf32>
    %cst_20 = arith.constant dense<0.000000e+00> : vector<8xf32>
    %37 = vector.multi_reduction <add>, %36, %cst_20 [1] : vector<8x128xf32> to vector<8xf32>
    %38 = vector.shape_cast %37 : vector<8xf32> to vector<8x1xf32>
    %39 = math.log %38 : vector<8x1xf32>
    %40 = arith.addf %33, %39 : vector<8x1xf32>
    %41 = vector.broadcast %40 : vector<8x1xf32> to vector<8x128xf32>
    %42 = arith.subf %31, %41 : vector<8x128xf32>
    %43 = arith.extf %28 : vector<8x256xbf16> to vector<8x256xf32>
    %44 = vector.broadcast %17 : vector<1x256xf32> to vector<8x256xf32>
    %45 = arith.mulf %43, %44 : vector<8x256xf32>
    %cst_21 = arith.constant dense<0.000000e+00> : vector<8xf32>
    %46 = vector.multi_reduction <add>, %45, %cst_21 [1] : vector<8x256xf32> to vector<8xf32>
    %47 = vector.shape_cast %46 : vector<8xf32> to vector<8x1xf32>
    %48 = vector.broadcast %18 : vector<1x1xf32> to vector<8x1xf32>
    %49 = arith.addf %47, %48 : vector<8x1xf32>
    %50 = tpu.iota {dimensions = array<i32: 1>} : vector<8x128xi32>
    %c8_i32 = arith.constant 8 : i32
    %51 = vector.broadcast %c8_i32 : i32 to vector<8x128xi32>
    %52 = arith.cmpi eq, %50, %51 : vector<8x128xi32>
    %53 = vector.shape_cast %49 : vector<8x1xf32> to vector<8x1xf32>
    %54 = vector.broadcast %53 : vector<8x1xf32> to vector<8x128xf32>
    %55 = arith.select %52, %54, %42 : vector<8x128xi1>, vector<8x128xf32>
    %c0_22 = arith.constant 0 : index
    %c0_23 = arith.constant 0 : index
    %56 = vector.load %arg5[%c0_22, %c0_23] : memref<8x128xf32, #tpu.memory_space<vmem>>, vector<8x128xf32>
    tpu.vector_store %arg5[%c0_22, %c0_23], %55 {strides = array<i32>} : memref<8x128xf32, #tpu.memory_space<vmem>>, vector<8x128xf32>,
    return
  }
  func.func @transform_0(%arg0: i32) -> (i32, i32) {
    %c0_i32 = arith.constant 0 : i32
    %c0_i32_0 = arith.constant 0 : i32
    return %arg0, %c0_i32 : i32, i32
  }
  func.func @transform_1(%arg0: i32) -> (i32, i32) {
    %c0_i32 = arith.constant 0 : i32
    %c0_i32_0 = arith.constant 0 : i32
    %c0_i32_1 = arith.constant 0 : i32
    return %c0_i32, %c0_i32_0 : i32, i32
  }
  func.func @transform_2(%arg0: i32) -> (i32, i32) {
    %c0_i32 = arith.constant 0 : i32
    %c0_i32_0 = arith.constant 0 : i32
    %c0_i32_1 = arith.constant 0 : i32
    return %c0_i32, %c0_i32_0 : i32, i32
  }
  func.func @transform_3(%arg0: i32) -> (i32, i32) {
    %c0_i32 = arith.constant 0 : i32
    %c0_i32_0 = arith.constant 0 : i32
    %c0_i32_1 = arith.constant 0 : i32
    return %c0_i32, %c0_i32_0 : i32, i32
  }
  func.func @transform_4(%arg0: i32) -> (i32, i32) {
    %c0_i32 = arith.constant 0 : i32
    %c0_i32_0 = arith.constant 0 : i32
    return %arg0, %c0_i32 : i32, i32
  }
}

</mosaic_0001>

<bundles_post_ra>
// kernel: actor_critic_forward.1
= control target key start
LH: loop header
LB: loop body
LE: loop exit
PB: predicated region body
PF: predicated region fallthrough
CT: control target
= control target key end

     0   :  { %9 = vsyncpa [#allocation3], 0  ;;  %s1530_s0 = inlined_call_operand.hbm [shape: f32[8,16], index: 0, kind: input, shape index: {}]   ;;  %s1531_s1 = inlined_call_operand.hbm [shape: bf16[16,512], index: 1, kind: input, shape index: {}]   ;;  %s1532_s2 = inlined_call_operand.hbm [shape: bf16[256,640], index: 2, kind: input, shape index: {}]   ;;  %s1533_s3 = inlined_call_operand.hbm [shape: f32[4,512], index: 3, kind: input, shape index: {}]   ;;  %s1534_s4 = inlined_call_operand.vmem [shape: f32[8,128], index: 4, kind: output, shape index: {}]  }
   0x1   :  { %10 = vsyncpa [#allocation5], 0  ;;  %s27_s17 = sshll.u32 %s1531_s1, 4  ;;  %s28_s17 = int_to_ptr.hbm [resolvable:$true] %s27_s17 }
   0x2   :  { %11 = vsyncpa [#allocation8], 0  ;;  %s1471_s18 = smov [#allocation4]   ;;  %s17_s22 = sshll.u32 %s1530_s0, 4  ;;  %s18_s22 = int_to_ptr.hbm [resolvable:$true] %s17_s22 }
   0x3   :  { %s29_s19 = sshll.u32 %s1471_s18, 4  ;;  %s1472_s23 = smov 256   ;;  %s30_s19 = int_to_ptr.vmem [resolvable:$true] %s29_s19 }
   0x4   :  { %s1473_s24 = smov 16   ;;  %s1474_s25 = smov [#allocation2]  }
   0x5   :  { %35 = dma.hbm_to_vmem [thread:$0]  %s28_s17, 512, %s30_s19, [#allocation5], %s1472_s23, %s1472_s23, %s1473_s24  }
   0x6   :  { %s19_s26 = sshll.u32 %s1474_s25, 4  ;;  %s40_s29 = sshll.u32 %s1532_s2, 4  ;;  %s20_s26 = int_to_ptr.vmem [resolvable:$true] %s19_s26  ;;  %s41_s29 = int_to_ptr.hbm [resolvable:$true] %s40_s29 }
   0x7   :  { %22 = dma.hbm_to_vmem [thread:$0]  %s18_s22, 128, %s20_s26, [#allocation3]  }
   0x8   :  { %s1475_s1 = smov [#allocation6]   ;;  %s54_s0 = sshll.u32 %s1533_s3, 4  ;;  %s55_s0 = int_to_ptr.hbm [resolvable:$true] %s54_s0 }
   0x9   :  { %s42_s30 = sshll.u32 %s1475_s1, 4  ;;  %s1476_s7 = smov 320   ;;  %s43_s30 = int_to_ptr.vmem [resolvable:$true] %s42_s30 }
   0xa   :  { %s1477_s8 = smov 20   ;;  %s1478_s9 = smov [#allocation7]  }
   0xb   :  { %48 = dma.hbm_to_vmem [thread:$0]  %s41_s29, 10240, %s43_s30, [#allocation5], %s1476_s7, %s1476_s7, %s1477_s8  }
   0xc   :  { %s56_s10 = sshll.u32 %s1478_s9, 4  ;;  %s57_s10 = int_to_ptr.vmem [resolvable:$true] %s56_s10 }
   0xd   :  { %59 = dma.hbm_to_vmem [thread:$0]  %s55_s0, 256, %s57_s10, [#allocation8]  }
   0xe   :  { %1465 = dma.done.wait [#allocation3], 128  }
   0xf   :  { %1466 = vsyncadd [#allocation3], 4294967168 }
  0x10   :  { %1467 = dma.done.wait [#allocation5], 10752  }
  0x11   :  { %1468 = vsyncadd [#allocation5], 4294956544 }
  0x12   :  { %1469 = dma.done.wait [#allocation8], 256  }
  0x13   :  { %1470 = vsyncadd [#allocation8], 4294967040  ;;  %v914_v0 = vld [vmem:[#allocation4] sm:$0xf]  ;;  %v1254_v1 = vld [vmem:[#allocation4 + $0xc] sm:$0xf0] }
  0x14   :  { %v1252_v2 = vld [vmem:[#allocation4 + $0x4] sm:$0xf]  ;;  %v915_v3 = vor.u32 %v1254_v1, %v914_v0  ;;  %v916_v4 = vld [vmem:[#allocation4 + $0x10] sm:$0xf0]  ;;  %v77_v5 = vld [vmem:[#allocation2] sm:$0xff]  ;;  %vm113_vm0 = vcmask 130048  }
  0x15   :  { %v922_v6 = vld [vmem:[#allocation4 + $0x8] sm:$0xf]  ;;  %v919_v7 = vor.u32 %v1252_v2, %v916_v4  ;;  %v78_v8 = vpack.c.bf16 %v77_v5, %v77_v5  ;;  %v1255_v9 = vld [vmem:[#allocation4 + $0x14] sm:$0xf0]  ;;  %v1253_v10 = vld [vmem:[#allocation4 + $0xc] sm:$0xf] }
  0x16   :  { %v924_v11 = vld [vmem:[#allocation4 + $0x18] sm:$0xf0]  ;;  %124 = vmatpush.bf16.msra.mxu2 %v915_v3  ;;  %v923_v12 = vor.u32 %v1255_v9, %v922_v6  ;;  %v990_v14 = vld [vmem:[#allocation6 + $0x118] sm:$0xf]  ;;  %v1271_v15 = vld [vmem:[#allocation6 + $0x128] sm:$0xf0] }
  0x17   :  { %v927_v13 = vor.u32 %v1253_v10, %v924_v11  ;;  %v1054_v16 = vld [vmem:[#allocation6 + $0x258] sm:$0xf]  ;;  %137 = vmatpush.bf16.msra.mxu3 %v919_v7  ;;  %v991_v17 = vor.u32 %v1271_v15, %v990_v14  ;;  %v1287_v18 = vld [vmem:[#allocation6 + $0x268] sm:$0xf0]  ;;  %v1270_v19 = vld [vmem:[#allocation6 + $0x11c] sm:$0xf] }
  0x18   :  { %v992_v20 = vld [vmem:[#allocation6 + $0x12c] sm:$0xf0]  ;;  %v1055_v21 = vor.u32 %v1287_v18, %v1054_v16  ;;  %v1286_v23 = vld [vmem:[#allocation6 + $0x25c] sm:$0xf]  ;;  %v1269_v27 = vld [vmem:[#allocation6 + $0x100] sm:$0xf0] }
  0x19   :  { %v995_v22 = vor.u32 %v1270_v19, %v992_v20  ;;  %v1056_v24 = vld [vmem:[#allocation6 + $0x26c] sm:$0xf0]  ;;  %928 = vmatmul.msk.bf16.vlgmr.msra.gmra.mxu2 %vm113_vm0, %v78_v8  ;;  %457 = vmatpush.bf16.msra.mxu0 %v991_v17  ;;  %v1285_v29 = vld [vmem:[#allocation6 + $0x240] sm:$0xf0]  ;;  %v1268_v32 = vld [vmem:[#allocation6 + $0xf4] sm:$0xf] }
  0x1a   :  { %150 = vmatpush.bf16.msrb.mxu2 %v923_v12  ;;  %v982_v25 = vld [vmem:[#allocation6 + $0xf0] sm:$0xf]  ;;  %v1059_v26 = vor.u32 %v1286_v23, %v1056_v24  ;;  %929 = vmatmul.msk.bf16.vlgmr.msra.gmra.mxu3 %vm113_vm0, %v78_v8  ;;  %v984_v33 = vld [vmem:[#allocation6 + $0x104] sm:$0xf0]  ;;  %v1284_v34 = vld [vmem:[#allocation6 + $0x234] sm:$0xf] }
  0x1b   :  { %163 = vmatpush.bf16.msrb.mxu3 %v927_v13  ;;  %v1046_v28 = vld [vmem:[#allocation6 + $0x230] sm:$0xf]  ;;  %470 = vmatpush.bf16.msra.mxu1 %v1055_v21  ;;  %v983_v30 = vor.u32 %v1269_v27, %v982_v25  ;;  %v987_v35 = vor.u32 %v1268_v32, %v984_v33  ;;  %v1048_v36 = vld [vmem:[#allocation6 + $0x244] sm:$0xf0]  ;;  %v1267_v38 = vld [vmem:[#allocation6 + $0xd8] sm:$0xf0] }
  0x1c   :  { %v1047_v31 = vor.u32 %v1285_v29, %v1046_v28  ;;  %v974_v37 = vld [vmem:[#allocation6 + $0xc8] sm:$0xf]  ;;  %v1051_v39 = vor.u32 %v1284_v34, %v1048_v36  ;;  %v1283_v41 = vld [vmem:[#allocation6 + $0x218] sm:$0xf0]  ;;  %v1266_v42 = vld [vmem:[#allocation6 + $0xcc] sm:$0xf] }
  0x1d   :  { %v1038_v40 = vld [vmem:[#allocation6 + $0x208] sm:$0xf]  ;;  %458 = vmatpush.bf16.msra.mxu0 %v983_v30  ;;  %v975_v43 = vor.u32 %v1267_v38, %v974_v37  ;;  %v976_v44 = vld [vmem:[#allocation6 + $0xdc] sm:$0xf0]  ;;  %v1282_v45 = vld [vmem:[#allocation6 + $0x20c] sm:$0xf] }
  0x1e   :  { %483 = vmatpush.bf16.msra.mxu2 %v995_v22  ;;  %v1040_v46 = vld [vmem:[#allocation6 + $0x21c] sm:$0xf0]  ;;  %v1039_v47 = vor.u32 %v1283_v41, %v1038_v40  ;;  %v979_v48 = vor.u32 %v1266_v42, %v976_v44  ;;  %v1265_v51 = vld [vmem:[#allocation6 + $0xb0] sm:$0xf0]  ;;  %v1264_v55 = vld [vmem:[#allocation6 + $0xa4] sm:$0xf] }
  0x1f   :  { %496 = vmatpush.bf16.msra.mxu3 %v1059_v26  ;;  %471 = vmatpush.bf16.msra.mxu1 %v1047_v31  ;;  %v1043_v49 = vor.u32 %v1282_v45, %v1040_v46  ;;  %v966_v50 = vld [vmem:[#allocation6 + $0xa0] sm:$0xf]  ;;  %v1281_v54 = vld [vmem:[#allocation6 + $0x1f0] sm:$0xf0]  ;;  %v968_v57 = vld [vmem:[#allocation6 + $0xb4] sm:$0xf0] }
  0x20   :  { %v967_v52 = vor.u32 %v1265_v51, %v966_v50  ;;  %v1030_v53 = vld [vmem:[#allocation6 + $0x1e0] sm:$0xf]  ;;  %v1280_v58 = vld [vmem:[#allocation6 + $0x1e4] sm:$0xf]  ;;  %v1032_v59 = vld [vmem:[#allocation6 + $0x1f4] sm:$0xf0]  ;;  %v971_v60 = vor.u32 %v1264_v55, %v968_v57 }
  0x21   :  { %459 = vmatpush.bf16.msra.mxu0 %v975_v43  ;;  %v1031_v56 = vor.u32 %v1281_v54, %v1030_v53  ;;  %v1035_v61 = vor.u32 %v1280_v58, %v1032_v59  ;;  %v958_v62 = vld [vmem:[#allocation6 + $0x78] sm:$0xf]  ;;  %v1263_v63 = vld [vmem:[#allocation6 + $0x88] sm:$0xf0]  ;;  %v1262_v3 = vld [vmem:[#allocation6 + $0x7c] sm:$0xf] }
  0x22   :  { %484 = vmatpush.bf16.msra.mxu2 %v987_v35  ;;  %v1022_v0 = vld [vmem:[#allocation6 + $0x1b8] sm:$0xf]  ;;  %v959_v1 = vor.u32 %v1263_v63, %v958_v62  ;;  %v1279_v2 = vld [vmem:[#allocation6 + $0x1c8] sm:$0xf0]  ;;  %v960_v4 = vld [vmem:[#allocation6 + $0x8c] sm:$0xf0] }
  0x23   :  { %497 = vmatpush.bf16.msra.mxu3 %v1051_v39  ;;  %472 = vmatpush.bf16.msra.mxu1 %v1039_v47  ;;  %v1023_v5 = vor.u32 %v1279_v2, %v1022_v0  ;;  %v963_v6 = vor.u32 %v1262_v3, %v960_v4  ;;  %v1278_v7 = vld [vmem:[#allocation6 + $0x1bc] sm:$0xf]  ;;  %v950_v10 = vld [vmem:[#allocation6 + $0x50] sm:$0xf]  ;;  %v1261_v11 = vld [vmem:[#allocation6 + $0x60] sm:$0xf0] }
  0x24   :  { %v1014_v12 = vld [vmem:[#allocation6 + $0x190] sm:$0xf]  ;;  %v951_v13 = vor.u32 %v1261_v11, %v950_v10  ;;  %v1277_v14 = vld [vmem:[#allocation6 + $0x1a0] sm:$0xf0]  ;;  %v1260_v15 = vld [vmem:[#allocation6 + $0x54] sm:$0xf] }
  0x25   :  { %460 = vmatpush.bf16.msra.mxu0 %v967_v52  ;;  %v952_v16 = vld [vmem:[#allocation6 + $0x64] sm:$0xf0]  ;;  %v1015_v17 = vor.u32 %v1277_v14, %v1014_v12  ;;  %v1276_v19 = vld [vmem:[#allocation6 + $0x194] sm:$0xf]  ;;  %v1259_v23 = vld [vmem:[#allocation6 + $0x38] sm:$0xf0] }
  0x26   :  { %485 = vmatpush.bf16.msra.mxu2 %v979_v48  ;;  %v955_v18 = vor.u32 %v1260_v15, %v952_v16  ;;  %v1016_v20 = vld [vmem:[#allocation6 + $0x1a4] sm:$0xf0]  ;;  %v1275_v25 = vld [vmem:[#allocation6 + $0x178] sm:$0xf0]  ;;  %v1258_v28 = vld [vmem:[#allocation6 + $0x2c] sm:$0xf] }
  0x27   :  { %498 = vmatpush.bf16.msra.mxu3 %v1043_v49  ;;  %473 = vmatpush.bf16.msra.mxu1 %v1031_v56  ;;  %v942_v21 = vld [vmem:[#allocation6 + $0x28] sm:$0xf]  ;;  %v1019_v22 = vor.u32 %v1276_v19, %v1016_v20  ;;  %v944_v29 = vld [vmem:[#allocation6 + $0x3c] sm:$0xf0]  ;;  %v1274_v30 = vld [vmem:[#allocation6 + $0x16c] sm:$0xf] }
  0x28   :  { %v1006_v24 = vld [vmem:[#allocation6 + $0x168] sm:$0xf]  ;;  %v943_v26 = vor.u32 %v1259_v23, %v942_v21  ;;  %v947_v31 = vor.u32 %v1258_v28, %v944_v29  ;;  %v1008_v32 = vld [vmem:[#allocation6 + $0x17c] sm:$0xf0]  ;;  %v1257_v34 = vld [vmem:[#allocation6 + $0x10] sm:$0xf0] }
  0x29   :  { %930 = vmatmul.msk.bf16.vlgmr.msrb.gmra.mxu2 %vm113_vm0, %v78_v8  ;;  %461 = vmatpush.bf16.msra.mxu0 %v959_v1  ;;  %v1007_v27 = vor.u32 %v1275_v25, %v1006_v24  ;;  %v934_v33 = vld [vmem:[#allocation6] sm:$0xf]  ;;  %v1011_v35 = vor.u32 %v1274_v30, %v1008_v32  ;;  %v1273_v37 = vld [vmem:[#allocation6 + $0x150] sm:$0xf0]  ;;  %v1256_v38 = vld [vmem:[#allocation6 + $0x4] sm:$0xf] }
  0x2a   :  { %931 = vmatmul.msk.bf16.vlgmr.msrb.gmra.mxu3 %vm113_vm0, %v78_v8  ;;  %486 = vmatpush.bf16.msra.mxu2 %v971_v60  ;;  %v1024_v8 = vld [vmem:[#allocation6 + $0x1cc] sm:$0xf0]  ;;  %v998_v36 = vld [vmem:[#allocation6 + $0x140] sm:$0xf]  ;;  %v935_v39 = vor.u32 %v1257_v34, %v934_v33  ;;  %v936_v40 = vld [vmem:[#allocation6 + $0x14] sm:$0xf0] }
  0x2b   :  { %499 = vmatpush.bf16.msra.mxu3 %v1035_v61  ;;  %v1027_v9 = vor.u32 %v1278_v7, %v1024_v8  ;;  %474 = vmatpush.bf16.msra.mxu1 %v1023_v5  ;;  %v1272_v41 = vld [vmem:[#allocation6 + $0x144] sm:$0xf]  ;;  %v1000_v42 = vld [vmem:[#allocation6 + $0x154] sm:$0xf0]  ;;  %v999_v43 = vor.u32 %v1273_v37, %v998_v36  ;;  %v939_v44 = vor.u32 %v1256_v38, %v936_v40  ;;  %v1118_v47 = vld [vmem:[#allocation6 + $0x120] sm:$0xf] }
  0x2c   :  { %v1003_v45 = vor.u32 %v1272_v41, %v1000_v42  ;;  %v1521_v46 = vld [vmem:[#allocation7] ss:$4 sm:$0xf]  ;;  %v1303_v48 = vld [vmem:[#allocation6 + $0x130] sm:$0xf0] }
  0x2d   :  { %462 = vmatpush.bf16.msra.mxu0 %v951_v13  ;;  %v1110_v49 = vld [vmem:[#allocation6 + $0xf8] sm:$0xf]  ;;  %v1119_v50 = vor.u32 %v1303_v48, %v1118_v47  ;;  %v1301_v51 = vld [vmem:[#allocation6 + $0x108] sm:$0xf0]  ;;  %v1182_v52 = vld [vmem:[#allocation6 + $0x260] sm:$0xf] }
  0x2e   :  { %487 = vmatpush.bf16.msra.mxu2 %v963_v6  ;;  %v1319_v53 = vld [vmem:[#allocation6 + $0x270] sm:$0xf0]  ;;  %v1102_v55 = vld [vmem:[#allocation6 + $0xd0] sm:$0xf]  ;;  %v1302_v56 = vld [vmem:[#allocation6 + $0x124] sm:$0xf]  ;;  %v1111_v57 = vor.u32 %v1301_v51, %v1110_v49 }
  0x2f   :  { %500 = vmatpush.bf16.msra.mxu3 %v1027_v9  ;;  %475 = vmatpush.bf16.msra.mxu1 %v1015_v17  ;;  %v1183_v54 = vor.u32 %v1319_v53, %v1182_v52  ;;  %v1120_v58 = vld [vmem:[#allocation6 + $0x134] sm:$0xf0]  ;;  %v1318_v59 = vld [vmem:[#allocation6 + $0x264] sm:$0xf]  ;;  %v1317_v1 = vld [vmem:[#allocation6 + $0x248] sm:$0xf0] }
  0x30   :  { %v1184_v60 = vld [vmem:[#allocation6 + $0x274] sm:$0xf0]  ;;  %v1299_v61 = vld [vmem:[#allocation6 + $0xe0] sm:$0xf0]  ;;  %v1123_v62 = vor.u32 %v1302_v56, %v1120_v58  ;;  %v85_v2 = vperm.slane %v1521_v46, 0  ;;  %v86_v3 = vperm.slane %v1521_v46, 1 }
  0x31   :  { %463 = vmatpush.bf16.msra.mxu0 %v943_v26  ;;  %v1187_v63 = vor.u32 %v1318_v59, %v1184_v60  ;;  %v1174_v0 = vld [vmem:[#allocation6 + $0x238] sm:$0xf]  ;;  %v1300_v5 = vld [vmem:[#allocation6 + $0xfc] sm:$0xf]  ;;  %v1112_v6 = vld [vmem:[#allocation6 + $0x10c] sm:$0xf0]  ;;  %v1103_v11 = vor.u32 %v1299_v61, %v1102_v55 }
  0x32   :  { %488 = vmatpush.bf16.msra.mxu2 %v955_v18  ;;  %v1175_v4 = vor.u32 %v1317_v1, %v1174_v0  ;;  %v1115_v7 = vor.u32 %v1300_v5, %v1112_v6  ;;  %v1316_v8 = vld [vmem:[#allocation6 + $0x23c] sm:$0xf]  ;;  %v1176_v9 = vld [vmem:[#allocation6 + $0x24c] sm:$0xf0]  ;;  %v1094_v12 = vld [vmem:[#allocation6 + $0xa8] sm:$0xf] }
  0x33   :  { %501 = vmatpush.bf16.msra.mxu3 %v1019_v22  ;;  %476 = vmatpush.bf16.msra.mxu1 %v1007_v27  ;;  %v1166_v10 = vld [vmem:[#allocation6 + $0x210] sm:$0xf]  ;;  %v1297_v13 = vld [vmem:[#allocation6 + $0xb8] sm:$0xf0]  ;;  %v1179_v14 = vor.u32 %v1316_v8, %v1176_v9  ;;  %v1315_v15 = vld [vmem:[#allocation6 + $0x220] sm:$0xf0] }
  0x34   :  { %v1167_v16 = vor.u32 %v1315_v15, %v1166_v10  ;;  %v1298_v17 = vld [vmem:[#allocation6 + $0xd4] sm:$0xf]  ;;  %v1104_v18 = vld [vmem:[#allocation6 + $0xe4] sm:$0xf0]  ;;  %v1313_v23 = vld [vmem:[#allocation6 + $0x1f8] sm:$0xf0]  ;;  %v1095_v29 = vor.u32 %v1297_v13, %v1094_v12 }
  0x35   :  { %464 = vmatpush.bf16.msra.mxu0 %v935_v39  ;;  %v1314_v19 = vld [vmem:[#allocation6 + $0x214] sm:$0xf]  ;;  %v1168_v21 = vld [vmem:[#allocation6 + $0x224] sm:$0xf0]  ;;  %v1107_v26 = vor.u32 %v1298_v17, %v1104_v18  ;;  %v1086_v30 = vld [vmem:[#allocation6 + $0x80] sm:$0xf] }
  0x36   :  { %489 = vmatpush.bf16.msra.mxu2 %v947_v31  ;;  %v1158_v22 = vld [vmem:[#allocation6 + $0x1e8] sm:$0xf]  ;;  %v1171_v27 = vor.u32 %v1314_v19, %v1168_v21  ;;  %v1296_v31 = vld [vmem:[#allocation6 + $0xac] sm:$0xf]  ;;  %v1096_v32 = vld [vmem:[#allocation6 + $0xbc] sm:$0xf0] }
  0x37   :  { %502 = vmatpush.bf16.msra.mxu3 %v1011_v35  ;;  %477 = vmatpush.bf16.msra.mxu1 %v999_v43  ;;  %v1295_v33 = vld [vmem:[#allocation6 + $0x90] sm:$0xf0]  ;;  %v1159_v34 = vor.u32 %v1313_v23, %v1158_v22  ;;  %v1312_v35 = vld [vmem:[#allocation6 + $0x1ec] sm:$0xf]  ;;  %v1160_v36 = vld [vmem:[#allocation6 + $0x1fc] sm:$0xf0]  ;;  %v1099_v40 = vor.u32 %v1296_v31, %v1096_v32 }
  0x38   :  { %v1150_v38 = vld [vmem:[#allocation6 + $0x1c0] sm:$0xf]  ;;  %v1311_v39 = vld [vmem:[#allocation6 + $0x1d0] sm:$0xf0]  ;;  %v1163_v41 = vor.u32 %v1312_v35, %v1160_v36  ;;  %v1294_v42 = vld [vmem:[#allocation6 + $0x84] sm:$0xf] }
  0x39   :  { %689 = vmatpush.bf16.msrb.mxu0 %v1119_v50  ;;  %v1088_v47 = vld [vmem:[#allocation6 + $0x94] sm:$0xf0]  ;;  %v1310_v48 = vld [vmem:[#allocation6 + $0x1c4] sm:$0xf]  ;;  %v1293_v51 = vld [vmem:[#allocation6 + $0x68] sm:$0xf0]  ;;  %v1151_v52 = vor.u32 %v1311_v39, %v1150_v38 }
  0x3a   :  { %490 = vmatpush.bf16.msra.mxu2 %v939_v44  ;;  %v1152_v49 = vld [vmem:[#allocation6 + $0x1d4] sm:$0xf0]  ;;  %v1309_v55 = vld [vmem:[#allocation6 + $0x1a8] sm:$0xf0]  ;;  %v1292_v59 = vld [vmem:[#allocation6 + $0x5c] sm:$0xf] }
  0x3b   :  { %503 = vmatpush.bf16.msra.mxu3 %v1003_v45  ;;  %702 = vmatpush.bf16.msrb.mxu1 %v1183_v54  ;;  %v1087_v45 = vor.u32 %v1295_v33, %v1086_v30  ;;  %v1078_v50 = vld [vmem:[#allocation6 + $0x58] sm:$0xf]  ;;  %v1155_v58 = vor.u32 %v1310_v48, %v1152_v49  ;;  %v1080_v61 = vld [vmem:[#allocation6 + $0x6c] sm:$0xf0]  ;;  %v1291_v1 = vld [vmem:[#allocation6 + $0x40] sm:$0xf0] }
  0x3c   :  { %v1142_v54 = vld [vmem:[#allocation6 + $0x198] sm:$0xf]  ;;  %v1079_v60 = vor.u32 %v1293_v51, %v1078_v50  ;;  %v1070_v0 = vld [vmem:[#allocation6 + $0x30] sm:$0xf]  ;;  %v87_v5 = vperm.slane %v1521_v46, 2  ;;  %v88_v6 = vperm.slane %v1521_v46, 3 }
  0x3d   :  { %690 = vmatpush.bf16.msrb.mxu0 %v1111_v57  ;;  %v1091_v57 = vor.u32 %v1294_v42, %v1088_v47  ;;  %v1290_v9 = vld [vmem:[#allocation6 + $0x34] sm:$0xf]  ;;  %v1072_v12 = vld [vmem:[#allocation6 + $0x44] sm:$0xf0]  ;;  %v1327_v23 = vld [vmem:[#allocation6 + $0x138] sm:$0xf0] }
  0x3e   :  { %715 = vmatpush.bf16.msrb.mxu2 %v1123_v62  ;;  %v1308_v62 = vld [vmem:[#allocation6 + $0x19c] sm:$0xf]  ;;  %v1306_v13 = vld [vmem:[#allocation6 + $0x174] sm:$0xf]  ;;  %v1062_v19 = vld [vmem:[#allocation6 + $0x8] sm:$0xf] }
  0x3f   :  { %728 = vmatpush.bf16.msrb.mxu3 %v1187_v63  ;;  %703 = vmatpush.bf16.msrb.mxu1 %v1175_v4  ;;  %v1144_v63 = vld [vmem:[#allocation6 + $0x1ac] sm:$0xf0]  ;;  %v1307_v4 = vld [vmem:[#allocation6 + $0x180] sm:$0xf0]  ;;  %v1218_v21 = vld [vmem:[#allocation6 + $0x128] sm:$0xf] }
  0x40   :  { %v1147_v8 = vor.u32 %v1308_v62, %v1144_v63  ;;  %v1250_v31 = vld [vmem:[#allocation6 + $0x268] sm:$0xf]  ;;  %v1335_v32 = vld [vmem:[#allocation6 + $0x278] sm:$0xf0]  ;;  %v1288_v33 = vld [vmem:[#allocation6 + $0xc] sm:$0xf]  ;;  %v1219_v42 = vor.u32 %v1327_v23, %v1218_v21 }
  0x41   :  { %691 = vmatpush.bf16.msrb.mxu0 %v1103_v11  ;;  %v1071_v11 = vor.u32 %v1291_v1, %v1070_v0  ;;  %v1064_v35 = vld [vmem:[#allocation6 + $0x1c] sm:$0xf0]  ;;  %v1304_v36 = vld [vmem:[#allocation6 + $0x14c] sm:$0xf]  ;;  %v1326_v48 = vld [vmem:[#allocation6 + $0x110] sm:$0xf0] }
  0x42   :  { %716 = vmatpush.bf16.msrb.mxu2 %v1115_v7  ;;  %v1083_v7 = vor.u32 %v1292_v59, %v1080_v61  ;;  %v1067_v49 = vor.u32 %v1288_v33, %v1064_v35  ;;  %v1246_v51 = vld [vmem:[#allocation6 + $0x240] sm:$0xf]  ;;  %v1206_v61 = vld [vmem:[#allocation6 + $0xb0] sm:$0xf]  ;;  %v1324_v62 = vld [vmem:[#allocation6 + $0xc0] sm:$0xf0] }
  0x43   :  { %729 = vmatpush.bf16.msrb.mxu3 %v1179_v14  ;;  %704 = vmatpush.bf16.msrb.mxu1 %v1167_v16  ;;  %v1136_v14 = vld [vmem:[#allocation6 + $0x184] sm:$0xf0]  ;;  %v1207_v1 = vor.u32 %v1324_v62, %v1206_v61  ;;  %v1194_v21 = vld [vmem:[#allocation6 + $0x38] sm:$0xf]  ;;  %v1230_v23 = vld [vmem:[#allocation6 + $0x1a0] sm:$0xf] }
  0x44   :  { %v1328_v33 = vld [vmem:[#allocation6 + $0x160] sm:$0xf0] }
  0x45   :  { %692 = vmatpush.bf16.msrb.mxu0 %v1095_v29  ;;  %v278_v35 = vld [vmem:[#allocation7 + $0x1] ss:$4 sm:$0x3] }
  0x46   :  { %717 = vmatpush.bf16.msrb.mxu2 %v1107_v26  ;;  %v1126_v26 = vld [vmem:[#allocation6 + $0x148] sm:$0xf] }
  0x47   :  { %730 = vmatpush.bf16.msrb.mxu3 %v1171_v27  ;;  %705 = vmatpush.bf16.msrb.mxu1 %v1159_v34  ;;  %v1305_v27 = vld [vmem:[#allocation6 + $0x158] sm:$0xf0] }
  0x49   :  { %693 = vmatpush.bf16.msrb.mxu0 %v1087_v45 }
  0x4a   :  { %718 = vmatpush.bf16.msrb.mxu2 %v1099_v40 }
  0x4b   :  { %731 = vmatpush.bf16.msrb.mxu3 %v1163_v41  ;;  %706 = vmatpush.bf16.msrb.mxu1 %v1151_v52  ;;  %v1127_v41 = vor.u32 %v1305_v27, %v1126_v26  ;;  %v1334_v52 = vld [vmem:[#allocation6 + $0x250] sm:$0xf0]  ;;  %v1190_v26 = vld [vmem:[#allocation6 + $0x10] sm:$0xf]  ;;  %v1320_v27 = vld [vmem:[#allocation6 + $0x20] sm:$0xf0] }
  0x4d   :  { %694 = vmatpush.bf16.msrb.mxu0 %v1079_v60 }
  0x4e   :  { %719 = vmatpush.bf16.msrb.mxu2 %v1091_v57  ;;  %v1210_v57 = vld [vmem:[#allocation6 + $0xd8] sm:$0xf] }
  0x4f   :  { %732 = vmatpush.bf16.msrb.mxu3 %v1155_v58  ;;  %v1325_v58 = vld [vmem:[#allocation6 + $0xe8] sm:$0xf0] }
  0x50   :  { %v1211_v59 = vor.u32 %v1325_v58, %v1210_v57 }
  0x51   :  { %695 = vmatpush.bf16.msrb.mxu0 %v1071_v11 }
  0x52   :  { %720 = vmatpush.bf16.msrb.mxu2 %v1083_v7  ;;  %v1333_v7 = vld [vmem:[#allocation6 + $0x228] sm:$0xf0] }
  0x53   :  { %733 = vmatpush.bf16.msrb.mxu3 %v1147_v8 }
  0x9c   :  { %v126_v20 = vpop.f32.mrf.mxu2 }
  0x9d   :  { %v127_v24 = vadd.f32 %v126_v20, %v85_v2  ;;  %v139_v25 = vpop.f32.mrf.mxu3  ;;  %v1143_v2 = vor.u32 %v1309_v55, %v1142_v54  ;;  %v1289_v20 = vld [vmem:[#allocation6 + $0x18] sm:$0xf0] }
  0x9e   :  { %v140_v28 = vadd.f32 %v139_v25, %v86_v3  ;;  %v1134_v3 = vld [vmem:[#allocation6 + $0x170] sm:$0xf]  ;;  %v1139_v25 = vor.u32 %v1306_v13, %v1136_v14  ;;  %v1063_v34 = vor.u32 %v1289_v20, %v1062_v19  ;;  %v1332_v13 = vld [vmem:[#allocation6 + $0x200] sm:$0xf0]  ;;  %v1331_v19 = vld [vmem:[#allocation6 + $0x1d8] sm:$0xf0] }
  0x9f   :  { %707 = vmatpush.bf16.msrb.mxu1 %v1143_v2  ;;  %v1135_v16 = vor.u32 %v1307_v4, %v1134_v3 }
  0xa0   :  { %v169_v37 = vpack.c.bf16 %v140_v28, %v127_v24  ;;  %v1075_v24 = vor.u32 %v1290_v9, %v1072_v12  ;;  %734 = vmatpush.bf16.msrb.mxu3 %v1139_v25  ;;  %696 = vmatpush.bf16.msrb.mxu0 %v1063_v34  ;;  %v1202_v9 = vld [vmem:[#allocation6 + $0x88] sm:$0xf]  ;;  %v1238_v12 = vld [vmem:[#allocation6 + $0x1f0] sm:$0xf] }
  0xa1   :  { %v1239_v14 = vor.u32 %v1332_v13, %v1238_v12 }
  0xa2   :  { %v171_v43 = vunpack.c.l.bf16 %v169_v37  ;;  %v172_v44 = vunpack.c.h.bf16 %v169_v37  ;;  %v1128_v37 = vld [vmem:[#allocation6 + $0x15c] sm:$0xf0]  ;;  %721 = vmatpush.bf16.msrb.mxu2 %v1075_v24  ;;  %v1330_v24 = vld [vmem:[#allocation6 + $0x1b0] sm:$0xf0] }
  0xa3   :  { %708 = vmatpush.bf16.msrb.mxu1 %v1135_v16  ;;  %v1131_v50 = vor.u32 %v1304_v36, %v1128_v37  ;;  %v1322_v16 = vld [vmem:[#allocation6 + $0x70] sm:$0xf0]  ;;  %v1231_v25 = vor.u32 %v1330_v24, %v1230_v23  ;;  %v286_v36 = vperm.slane %v278_v35, 0 }
  0xa4   :  { %1349 = vtanh.f32 %v171_v43  ;;  %v128_v53 = vpop.f32.mrf.mxu2  ;;  %v1214_v43 = vld [vmem:[#allocation6 + $0x100] sm:$0xf] }
  0xa5   :  { %1351 = vtanh.f32 %v172_v44  ;;  %v141_v56 = vpop.f32.mrf.mxu3  ;;  %v1251_v44 = vor.u32 %v1335_v32, %v1250_v31  ;;  %v1215_v55 = vor.u32 %v1326_v48, %v1214_v43  ;;  %735 = vmatpush.bf16.msrb.mxu3 %v1131_v50  ;;  %v1222_v32 = vld [vmem:[#allocation6 + $0x150] sm:$0xf] }
  0xa6   :  { %v1247_v56 = vor.u32 %v1334_v52, %v1246_v51  ;;  %722 = vmatpush.bf16.msrb.mxu2 %v1067_v49  ;;  %v1223_v34 = vor.u32 %v1328_v33, %v1222_v32  ;;  %v280_v51 = vld [vmem:[#allocation7 + $0x9] ss:$4 sm:$0x3] }
  0xa7   :  { %709 = vmatpush.bf16.msrb.mxu1 %v1127_v41  ;;  %v287_v41 = vperm.slane %v278_v35, 1  ;;  %v1348_v35 = vld [vmem:[#allocation7 + $0xb] ss:$0 sm:$0xff] }
  0xaa   :  { %v1350_v10 = vpop.eup %1349 }
  0xab   :  { %v1352_v15 = vpop.eup %1351 }
  0xac   :  { %v179_v17 = vpack.c.bf16 %v1352_v15, %v1350_v10  ;;  %v152_v18 = vpop.f32.mrf.mxu2  ;;  %v1323_v10 = vld [vmem:[#allocation6 + $0x98] sm:$0xf0]  ;;  %v1198_v15 = vld [vmem:[#allocation6 + $0x60] sm:$0xf] }
  0xad   :  { %v153_v46 = vadd.f32 %v152_v18, %v87_v5  ;;  %v165_v22 = vpop.f32.mrf.mxu3  ;;  %v1203_v11 = vor.u32 %v1323_v10, %v1202_v9  ;;  %v1234_v18 = vld [vmem:[#allocation6 + $0x1c8] sm:$0xf] }
  0xae   :  { %v291_v28 = vunpack.c.l.b16 %v179_v17  ;;  %v292_v29 = vunpack.c.h.b16 %v179_v17  ;;  %v166_v30 = vadd.f32 %v165_v22, %v88_v6  ;;  %v1242_v6 = vld [vmem:[#allocation6 + $0x218] sm:$0xf]  ;;  %v1199_v17 = vor.u32 %v1322_v16, %v1198_v15  ;;  %v1347_v16 = vld [vmem:[#allocation7 + $0x2] ss:$0 sm:$0xff] }
  0xaf   :  { %v1243_v8 = vor.u32 %v1333_v7, %v1242_v6  ;;  %v1235_v20 = vor.u32 %v1331_v19, %v1234_v18  ;;  %v283_v18 = vld [vmem:[#allocation7 + $0x3] ss:$4 sm:$0x3] }
  0xb0   :  { %v293_v38 = vpack.c.b16 %v291_v28, %v291_v28  ;;  %v294_v39 = vpack.c.b16 %v292_v29, %v292_v29  ;;  %v170_v40 = vpack.c.bf16 %v166_v30, %v153_v46  ;;  %v1321_v46 = vld [vmem:[#allocation6 + $0x48] sm:$0xf0]  ;;  %v1191_v28 = vor.u32 %v1320_v27, %v1190_v26  ;;  %v1226_v29 = vld [vmem:[#allocation6 + $0x178] sm:$0xf] }
  0xb1   :  { %v1195_v22 = vor.u32 %v1321_v46, %v1194_v21  ;;  %v1329_v30 = vld [vmem:[#allocation6 + $0x188] sm:$0xf0]  ;;  %v884_v24 = vperm.slane %v283_v18, 0 }
  0xb2   :  { %465 = vmatmul.bf16.vlgmr.msra.gmra.mxu0 %v293_v38  ;;  %478 = vmatmul.bf16.vlgmr.msra.gmra.mxu1 %v294_v39  ;;  %v173_v45 = vunpack.c.l.bf16 %v170_v40  ;;  %v174_v47 = vunpack.c.h.bf16 %v170_v40  ;;  %v1227_v31 = vor.u32 %v1329_v30, %v1226_v29  ;;  %v1479_v30 = vmov 0  }
  0xb3   :  { %491 = vmatmul.bf16.vlgmr.msra.gmra.mxu2 %v293_v38  ;;  %504 = vmatmul.bf16.vlgmr.msra.gmra.mxu3 %v294_v39 }
  0xb4   :  { %1353 = vtanh.f32 %v173_v45  ;;  %v154_v53 = vpop.f32.mrf.mxu2  ;;  %844 = vmatpush.bf16.msra.mxu0 %v1219_v42  ;;  %857 = vmatpush.bf16.msra.mxu1 %v1251_v44 }
  0xb5   :  { %1355 = vtanh.f32 %v174_v47  ;;  %v167_v54 = vpop.f32.mrf.mxu3  ;;  %v518_v53 = vperm.slane %v280_v51, 0  ;;  %1345 = vset.pattern.permute.xlu1 %v1479_v30  ;;  %1346 = vset.pattern.permute.xlu0 %v1479_v30 }
  0xb8   :  { %845 = vmatpush.bf16.msra.mxu0 %v1215_v55  ;;  %858 = vmatpush.bf16.msra.mxu1 %v1247_v56 }
  0xba   :  { %v1354_v60 = vpop.eup %1353 }
  0xbb   :  { %v1356_v63 = vpop.eup %1355 }
  0xbc   :  { %v180_v0 = vpack.c.bf16 %v1356_v63, %v1354_v60  ;;  %846 = vmatpush.bf16.msra.mxu0 %v1211_v59  ;;  %859 = vmatpush.bf16.msra.mxu1 %v1243_v8  ;;  %v519_v63 = vperm.slane %v280_v51, 1 }
  0xbe   :  { %v523_v2 = vunpack.c.l.b16 %v180_v0  ;;  %v524_v3 = vunpack.c.h.b16 %v180_v0 }
  0xc0   :  { %v525_v4 = vpack.c.b16 %v523_v2, %v523_v2  ;;  %v526_v5 = vpack.c.b16 %v524_v3, %v524_v3  ;;  %847 = vmatpush.bf16.msra.mxu0 %v1207_v1  ;;  %860 = vmatpush.bf16.msra.mxu1 %v1239_v14 }
  0xc2   :  { %697 = vmatmul.bf16.vlgmr.msrb.gmra.mxu0 %v525_v4  ;;  %710 = vmatmul.bf16.vlgmr.msrb.gmra.mxu1 %v526_v5 }
  0xc3   :  { %723 = vmatmul.bf16.vlgmr.msrb.gmra.mxu2 %v525_v4  ;;  %736 = vmatmul.bf16.vlgmr.msrb.gmra.mxu3 %v526_v5 }
  0xc4   :  { %848 = vmatpush.bf16.msra.mxu0 %v1203_v11  ;;  %861 = vmatpush.bf16.msra.mxu1 %v1235_v20 }
  0xc8   :  { %849 = vmatpush.bf16.msra.mxu0 %v1199_v17  ;;  %862 = vmatpush.bf16.msra.mxu1 %v1231_v25  ;;  %v885_v25 = vperm.slane %v283_v18, 1 }
  0xcc   :  { %850 = vmatpush.bf16.msra.mxu0 %v1195_v22  ;;  %863 = vmatpush.bf16.msra.mxu1 %v1227_v31 }
  0xd0   :  { %851 = vmatpush.bf16.msra.mxu0 %v1191_v28  ;;  %864 = vmatpush.bf16.msra.mxu1 %v1223_v34 }
 0x12f   :  { %v466_v37 = vpop.f32.mrf.mxu0  ;;  %v479_v38 = vpop.f32.mrf.mxu1 }
 0x130   :  { %v467_v39 = vadd.f32 %v466_v37, %v286_v36 }
 0x132   :  { %v480_v40 = vadd.f32 %v479_v38, %v467_v39 }
 0x134   :  { %v509_v42 = vpack.c.bf16 %v480_v40, %v480_v40  ;;  %v895_v40 = vlaneseq }
 0x136   :  { %v511_v43 = vunpack.c.l.bf16 %v509_v42  ;;  %v492_v44 = vpop.f32.mrf.mxu2  ;;  %v505_v45 = vpop.f32.mrf.mxu3  ;;  %v896_v42 = vand.u32 127, %v895_v40 }
 0x137   :  { %v493_v47 = vadd.f32 %v492_v44, %v287_v41  ;;  %v468_v48 = vpop.f32.mrf.mxu0  ;;  %v481_v49 = vpop.f32.mrf.mxu1 }
 0x138   :  { %1357 = vtanh.f32 %v511_v43  ;;  %vm897_vm1 = vcmp.eq.s32.totalorder %v896_v42, 8 }
 0x139   :  { %v506_v50 = vadd.f32 %v505_v45, %v493_v47 }
 0x13b   :  { %v510_v52 = vpack.c.bf16 %v506_v50, %v506_v50 }
 0x13d   :  { %v512_v54 = vunpack.c.l.bf16 %v510_v52 }
 0x13e   :  { %v1358_v55 = vpop.eup %1357  ;;  %v494_v56 = vpop.f32.mrf.mxu2 }
 0x13f   :  { %v507_v57 = vpop.f32.mrf.mxu3  ;;  %v515_v58 = vpack.c.bf16 %v1358_v55, %v1358_v55  ;;  %1359 = vtanh.f32 %v512_v54  ;;  %v698_v59 = vpop.f32.mrf.mxu0 }
 0x140   :  { %v711_v60 = vpop.f32.mrf.mxu1  ;;  %v699_v61 = vadd.f32 %v698_v59, %v518_v53 }
 0x141   :  { %852 = vmatmul.bf16.vlgmr.msra.gmra.mxu0 %v515_v58 }
 0x142   :  { %v712_v62 = vadd.f32 %v711_v60, %v699_v61 }
 0x145   :  { %v1360_v0 = vpop.eup %1359 }
 0x146   :  { %v516_v1 = vpack.c.bf16 %v1360_v0, %v1360_v0  ;;  %v724_v2 = vpop.f32.mrf.mxu2 }
 0x147   :  { %v737_v3 = vpop.f32.mrf.mxu3  ;;  %v725_v4 = vadd.f32 %v724_v2, %v519_v63  ;;  %v700_v5 = vpop.f32.mrf.mxu0 }
 0x148   :  { %v713_v6 = vpop.f32.mrf.mxu1  ;;  %865 = vmatmul.bf16.vlgmr.msra.gmra.mxu1 %v516_v1 }
 0x149   :  { %v738_v7 = vadd.f32 %v737_v3, %v725_v4 }
 0x14b   :  { %v741_v8 = vpack.c.bf16 %v738_v7, %v712_v62 }
 0x14d   :  { %v742_v11 = vunpack.c.l.bf16 %v741_v8  ;;  %v743_v12 = vunpack.c.h.bf16 %v741_v8 }
 0x14e   :  { %v726_v9 = vpop.f32.mrf.mxu2 }
 0x14f   :  { %v739_v10 = vpop.f32.mrf.mxu3  ;;  %1361 = vtanh.f32 %v742_v11 }
 0x150   :  { %1363 = vtanh.f32 %v743_v12 }
 0x155   :  { %v1362_v13 = vpop.eup %1361 }
 0x156   :  { %v1364_v14 = vpop.eup %1363 }
 0x157   :  { %v746_v17 = vpack.c.bf16 %v1364_v14, %v1362_v13 }
 0x159   :  { %v881_v21 = vunpack.c.l.bf16 %v746_v17  ;;  %v882_v23 = vunpack.c.h.bf16 %v746_v17 }
 0x15b   :  { %v888_v26 = vmul.f32 %v884_v24, %v881_v21  ;;  %v889_v27 = vmul.f32 %v885_v25, %v882_v23 }
 0x15d   :  { %v890_v29 = vadd.f32 %v889_v27, %v888_v26 }
 0x1be   :  { %v853_v15 = vpop.f32.mrf.mxu0 }
 0x1bf   :  { %v854_v19 = vadd.f32 %v1347_v16, %v853_v15 }
 0x1c5   :  { %v866_v20 = vpop.f32.mrf.mxu1 }
 0x1c6   :  { %v867_v46 = vadd.f32 %v866_v20, %v854_v19  ;;  %v855_v22 = vpop.f32.mrf.mxu0 }
 0x1c8   :  { %870 = vmax.xlane.f32.xlu0 %v867_v46 }
 0x1cd   :  { %v868_v28 = vpop.f32.mrf.mxu1 }
 0x1d0   :  { %891 = vadd.xlane.f32.xlu0 %v890_v29 }
 0x23b   :  { %v871_v31 = vpop.xlane.xlu0 %870 }
 0x23c   :  { %v872_v32 = vsub.f32 %v867_v46, %v871_v31 }
 0x23e   :  { %v873_v33 = vmul.f32 1.442695, %v872_v32 }
 0x240   :  { %1365 = vpow2.f32 %v873_v33 }
 0x243   :  { %v892_v36 = vpop.xlane.xlu0 %891 }
 0x244   :  { %v894_v37 = vadd.f32 %v1348_v35, %v892_v36 }
 0x246   :  { %v1366_v34 = vpop.eup %1365 }
 0x247   :  { %875 = vadd.xlane.f32.xlu1 %v1366_v34 }
 0x260   :  { %900 = vperm.xlu1 %1345, %v894_v37  }
 0x2ba   :  { %v876_v38 = vpop.xlane.xlu1 %875 }
 0x2bb   :  { %1367 = vlog2.f32 %v876_v38 }
 0x2c1   :  { %v1368_v39 = vpop.eup %1367 }
 0x2c2   :  { %v878_v41 = vmul.f32 0.6931472, %v1368_v39 }
 0x2c4   :  { %v879_v43 = vadd.f32 %v878_v41, %v871_v31 }
 0x2c6   :  { %v880_v44 = vsub.f32 %v867_v46, %v879_v43 }
 0x2d2   :  { %v901_v45 = vpop.permute.xlu1 %900 }
 0x2d3   :  { %v903_v47 = vsel %vm897_vm1, %v901_v45, %v880_v44 }
 0x2d4   :  { %904 = vst [vmem:[%s1534_s4] sm:$0xff] %v903_v47 }
 0x2d5   :  { %909 = vsyncpa [#allocation3], 1 }
 0x2d6   :  { %910 = vsyncpa [#allocation5], 1 }
 0x2d7   :  { %911 = vsyncpa [#allocation8], 1 }

</bundles_post_ra>
